<compile_context>
chip_gen: v6e
topology: v6e:2x2x1
jax: 0.10.0
libtpu: 0.0.40
codegen_flags: <defaults>
</compile_context>

<pallas_src>
import functools

import jax
import jax.numpy as jnp
from jax.experimental import pallas as pl
from jax.experimental.pallas import tpu as pltpu

_LANE = 128


def _round_up(x, m):
    return (x + m - 1) // m * m


def _vmem_capacity_bytes(default=64 << 20):
    """Physical VMEM per TensorCore (v7x: 64 MiB, v5e/v6e: 128 MiB)."""
    try:
        info = pltpu.get_tpu_info()
        cap = int(getattr(info, "vmem_capacity_bytes", default))
        return cap if cap > 0 else default
    except Exception:
        return default


def _matmul_shift_relu_kernel(p_ref, w_ref, shift_ref, o_ref, *, w_resident):
    """One (tm, cout_p) f32 output tile, accumulated in place over the K grid axis."""
    kk = pl.program_id(1)

    @pl.when(kk == 0)
    def _():
        o_ref[...] = jnp.zeros_like(o_ref)

    if w_resident:
        tk = p_ref.shape[1]
        k0 = pl.multiple_of(kk * tk, 128)
        w = w_ref[pl.ds(k0, tk), :]        # weight stays resident; slice the K window
    else:
        w = w_ref[...]                     # streamed (tk, cout_p) weight tile

    o_ref[...] += jnp.dot(p_ref[...], w, preferred_element_type=jnp.float32)

    @pl.when(kk == pl.num_programs(1) - 1)
    def _():
        y = o_ref[...] + shift_ref[...]    # BN shift (scale already folded into W)
        o_ref[...] = jnp.maximum(y, 0.0).astype(o_ref.dtype)


def _im2col_nchw(x, kh, kw, stride, padding):
    """x: (N, Cin, H, W) -> patches (N*Hout*Wout, Cin*kh*kw), column order (ci, kh, kw)."""
    n, cin, h, w = x.shape
    xp = jnp.pad(x, ((0, 0), (0, 0), (padding, padding), (padding, padding)))
    hout = (h + 2 * padding - kh) // stride + 1
    wout = (w + 2 * padding - kw) // stride + 1
    cols = []
    for i in range(kh):
        for j in range(kw):
            sl = xp[:, :, i:i + stride * hout:stride, j:j + stride * wout:stride]
            cols.append(sl)                                   # (N, Cin, Hout, Wout)
    patches = jnp.stack(cols, axis=2)                         # (N, Cin, kh*kw, Hout, Wout)
    patches = patches.reshape(n, cin * kh * kw, hout, wout)
    patches = patches.transpose(0, 2, 3, 1).reshape(n * hout * wout, cin * kh * kw)
    return patches, hout, wout


def basic_conv_forward(x, weight, gamma, beta, running_mean, running_var,
                       *, stride=1, padding=0, eps=1e-5,
                       tm_max=1024, compute_dtype=jnp.bfloat16):
    """BasicConv forward: Conv2d(bias=False) -> BatchNorm2d(eval) -> ReLU.

    x:      (N, Cin, H, W)        float32, NCHW (PyTorch convention)
    weight: (Cout, Cin, KH, KW)   float32
    returns (N, Cout, Hout, Wout) float32
    """
    n, cin, h, w = x.shape
    cout, _, kh, kw = weight.shape

    # im2col glue, materialized directly in the compute dtype (single bf16 pass).
    patches, hout, wout = _im2col_nchw(x.astype(compute_dtype), kh, kw, stride, padding)
    m, k = patches.shape

    # Fold BN (inference / running stats) into the weight + a per-channel shift.
    scale = gamma * jax.lax.rsqrt(running_var + eps)                   # (Cout,)
    shift = beta - running_mean * scale                                # (Cout,)
    w_mat = weight.reshape(cout, cin * kh * kw).T * scale[None, :]     # (K, Cout) f32

    cout_p = _round_up(cout, _LANE)
    itemsize = jnp.dtype(compute_dtype).itemsize

    # ---------- per-generation VMEM budget & tile selection ----------
    vmem_cap = _vmem_capacity_bytes()
    budget = int(vmem_cap * 0.70)

    m_lane = _round_up(m, _LANE)
    tm = min(tm_max, m_lane)
    if m_lane >= 2 * _LANE:                       # >=2 M tiles -> both v7x TCs get work
        tm = min(tm, _round_up((m_lane + 1) // 2, _LANE))

    k_lane = _round_up(k, _LANE)

    def tiles_bytes(tm_, tk_, resident_):
        b = 2 * tm_ * tk_ * itemsize              # patch tile (double buffered)
        b += 2 * tm_ * cout_p * 4                 # f32 output tile (double buffered)
        b += 2 * cout_p * 4                       # shift row
        if resident_:
            b += 2 * _round_up(k, tk_) * cout_p * itemsize   # full resident weight
        else:
            b += 2 * tk_ * cout_p * itemsize      # streamed weight tile
        return b

    def pick_tk(tm_):
        for resident in (True, False):            # prefer the resident-weight path
            tk_ = k_lane
            while True:
                if tiles_bytes(tm_, tk_, resident) <= budget:
                    return tk_, resident
                nxt = _round_up(tk_ // 2, _LANE)
                if nxt == tk_:
                    break
                tk_ = nxt
        return None

    tm_sel = tm
    while True:
        picked = pick_tk(tm_sel)
        if picked is not None:
            break
        nxt = _round_up(tm_sel // 2, _LANE)
        if nxt == tm_sel:
            picked = (_LANE, False)               # last resort: minimal tiles
            break
        tm_sel = nxt
    tk_sel, w_resident = picked

    m_p = _round_up(m, tm_sel)
    k_p = _round_up(k, tk_sel)

    # ---------- pad operands to the tiled sizes ----------
    patches_p = jnp.pad(patches, ((0, m_p - m), (0, k_p - k)))
    w_p = jnp.pad(w_mat.astype(compute_dtype), ((0, k_p - k), (0, cout_p - cout)))
    shift_p = jnp.pad(shift.astype(jnp.float32)[None, :], ((0, 0), (0, cout_p - cout)))

    grid = (m_p // tm_sel, k_p // tk_sel)

    if w_resident:
        w_spec = pl.BlockSpec((k_p, cout_p), lambda i, kk: (0, 0))     # fetched once
    else:
        w_spec = pl.BlockSpec((tk_sel, cout_p), lambda i, kk: (kk, 0))  # streamed

    need = tiles_bytes(tm_sel, tk_sel, w_resident)
    vmem_limit = int(min(max(need + (4 << 20), 32 << 20), int(vmem_cap * 0.85)))

    out_flat = pl.pallas_call(
        functools.partial(_matmul_shift_relu_kernel, w_resident=w_resident),
        out_shape=jax.ShapeDtypeStruct((m_p, cout_p), jnp.float32),
        grid_spec=pltpu.PrefetchScalarGridSpec(
            num_scalar_prefetch=0,
            grid=grid,
            in_specs=[
                pl.BlockSpec((tm_sel, tk_sel), lambda i, kk: (i, kk)),
                w_spec,
                pl.BlockSpec((1, cout_p), lambda i, kk: (0, 0)),
            ],
            out_specs=pl.BlockSpec((tm_sel, cout_p), lambda i, kk: (i, 0)),
        ),
        compiler_params=pltpu.CompilerParams(
            dimension_semantics=("parallel", "arbitrary"),
            vmem_limit_bytes=vmem_limit,
        ),
    )(patches_p, w_p, shift_p)

    # Strip padding, reshape back to NCHW (PyTorch convention).
    out = out_flat[:m, :cout].reshape(n, hout, wout, cout).transpose(0, 3, 1, 2)
    return out


def _reference(x, weight, gamma, beta, running_mean, running_var,
               *, stride=1, padding=0, eps=1e-5):
    y = jax.lax.conv_general_dilated(
        x, weight, window_strides=(stride, stride),
        padding=[(padding, padding), (padding, padding)],
        dimension_numbers=("NCHW", "OIHW", "NCHW"))
    scale = (gamma / jnp.sqrt(running_var + eps))[None, :, None, None]
    shift = (beta - running_mean * gamma / jnp.sqrt(running_var + eps))[None, :, None, None]
    return jnp.maximum(y * scale + shift, 0.0)


if __name__ == "__main__":
    # Small shapes consistent with BasicConv(in_planes=4, out_planes=8,
    # kernel_size=3, stride=1, padding=1, relu=True, bn=True, bias=False).
    N, CIN, H, W = 2, 4, 16, 16
    COUT, KH, KW = 8, 3, 3
    STRIDE, PAD = 1, 1

    key = jax.random.PRNGKey(0)
    kx, kw_, kg, kb, km, kv = jax.random.split(key, 6)

    x = jax.random.normal(kx, (N, CIN, H, W), dtype=jnp.float32)
    weight = jax.random.normal(kw_, (COUT, CIN, KH, KW), dtype=jnp.float32) * 0.1
    gamma = 1.0 + 0.1 * jax.random.normal(kg, (COUT,), dtype=jnp.float32)
    beta = 0.1 * jax.random.normal(kb, (COUT,), dtype=jnp.float32)
    running_mean = 0.1 * jax.random.normal(km, (COUT,), dtype=jnp.float32)
    running_var = jnp.abs(1.0 + 0.1 * jax.random.normal(kv, (COUT,), dtype=jnp.float32))

    out = basic_conv_forward(x, weight, gamma, beta, running_mean, running_var,
                             stride=STRIDE, padding=PAD)
    jax.block_until_ready(out)

    ref = _reference(x, weight, gamma, beta, running_mean, running_var,
                     stride=STRIDE, padding=PAD)
    assert out.shape == (N, COUT, H, W)
    # bf16 MXU inputs with f32 accumulation -> slightly looser tolerance.
    assert jnp.allclose(out, ref, atol=5e-2, rtol=5e-2), \
        float(jnp.max(jnp.abs(out - ref)))

    print("KERNEL_OK")
</pallas_src>

<mosaic_0001>
module attributes {stable_mosaic.version = 11 : i64} {
  func.func @_matmul_shift_relu_kernel(%arg0: i32, %arg1: i32, %arg2: memref<256x128xbf16, #tpu.memory_space<vmem>>, %arg3: memref<128x128xbf16, #tpu.memory_space<vmem>>, %arg4: memref<1x128xf32, #tpu.memory_space<vmem>>, %arg5: memref<256x128xf32, #tpu.memory_space<vmem>>) attributes {dimension_semantics = [#tpu.dimension_semantics<parallel>, #tpu.dimension_semantics<arbitrary>], iteration_bounds = array<i64: 2, 1>, scalar_prefetch = 0 : i64, scratch_operands = 0 : i64, tpu.core_type = #tpu.core_type<tc>, window_params = [{transform_indices = @transform_0, window_bounds = array<i64: 256, 128>}, {pipeline_mode = #tpu.pipeline_mode<synchronous>, transform_indices = @transform_1, window_bounds = array<i64: 128, 128>}, {pipeline_mode = #tpu.pipeline_mode<synchronous>, transform_indices = @transform_2, window_bounds = array<i64: 1, 128>}, {transform_indices = @transform_3, window_bounds = array<i64: 256, 128>}]} {
    %c0_i32 = arith.constant 0 : i32
    %0 = arith.cmpi eq, %arg1, %c0_i32 : i32
    %1 = arith.extui %0 : i1 to i32
    %c0_i32_0 = arith.constant 0 : i32
    %2 = arith.cmpi ne, %1, %c0_i32_0 : i32
    scf.if %2 {
      %cst_9 = arith.constant 0.000000e+00 : f32
      %15 = vector.broadcast %cst_9 : f32 to vector<256x128xf32>
      %c0_10 = arith.constant 0 : index
      %c0_11 = arith.constant 0 : index
      %16 = vector.load %arg5[%c0_10, %c0_11] : memref<256x128xf32, #tpu.memory_space<vmem>>, vector<256x128xf32>
      tpu.vector_store %arg5[%c0_10, %c0_11], %15 {strides = array<i32>} : memref<256x128xf32, #tpu.memory_space<vmem>>, vector<256x128xf32>,
    } else {
    }
    %c128_i32 = arith.constant 128 : i32
    %3 = arith.muli %arg1, %c128_i32 : i32
    %4 = tpu.assume_multiple %3, 128 : i32
    %5 = arith.index_cast %4 : i32 to index
    %c0 = arith.constant 0 : index
    %6 = vector.load %arg3[%5, %c0] : memref<128x128xbf16, #tpu.memory_space<vmem>>, vector<128x128xbf16>
    %c0_1 = arith.constant 0 : index
    %c0_2 = arith.constant 0 : index
    %7 = vector.load %arg5[%c0_1, %c0_2] : memref<256x128xf32, #tpu.memory_space<vmem>>, vector<256x128xf32>
    %c0_3 = arith.constant 0 : index
    %c0_4 = arith.constant 0 : index
    %8 = vector.load %arg2[%c0_3, %c0_4] : memref<256x128xbf16, #tpu.memory_space<vmem>>, vector<256x128xbf16>
    %cst = arith.constant dense<0.000000e+00> : vector<256x128xf32>
    %9 = tpu.matmul %8, %6, %cst {dimension_numbers = #tpu.dot_dimension_numbers<[1], [0], [0], [1], [0, 0, 1, 1], [], []>} : vector<256x128xbf16>, vector<128x128xbf16>, vector<256x128xf32> -> vector<256x128xf32>
    %10 = arith.addf %7, %9 : vector<256x128xf32>
    %c0_5 = arith.constant 0 : index
    %c0_6 = arith.constant 0 : index
    %11 = vector.load %arg5[%c0_5, %c0_6] : memref<256x128xf32, #tpu.memory_space<vmem>>, vector<256x128xf32>
    tpu.vector_store %arg5[%c0_5, %c0_6], %10 {strides = array<i32>} : memref<256x128xf32, #tpu.memory_space<vmem>>, vector<256x128xf32>,
    %c0_i32_7 = arith.constant 0 : i32
    %12 = arith.cmpi eq, %arg1, %c0_i32_7 : i32
    %13 = arith.extui %12 : i1 to i32
    %c0_i32_8 = arith.constant 0 : i32
    %14 = arith.cmpi ne, %13, %c0_i32_8 : i32
    scf.if %14 {
      %c0_9 = arith.constant 0 : index
      %c0_10 = arith.constant 0 : index
      %15 = vector.load %arg5[%c0_9, %c0_10] : memref<256x128xf32, #tpu.memory_space<vmem>>, vector<256x128xf32>
      %c0_11 = arith.constant 0 : index
      %c0_12 = arith.constant 0 : index
      %16 = vector.load %arg4[%c0_11, %c0_12] : memref<1x128xf32, #tpu.memory_space<vmem>>, vector<1x128xf32>
      %17 = vector.broadcast %16 : vector<1x128xf32> to vector<256x128xf32>
      %18 = arith.addf %15, %17 : vector<256x128xf32>
      %cst_13 = arith.constant 0.000000e+00 : f32
      %19 = vector.broadcast %cst_13 : f32 to vector<256x128xf32>
      %20 = arith.maximumf %18, %19 : vector<256x128xf32>
      %c0_14 = arith.constant 0 : index
      %c0_15 = arith.constant 0 : index
      %21 = vector.load %arg5[%c0_14, %c0_15] : memref<256x128xf32, #tpu.memory_space<vmem>>, vector<256x128xf32>
      tpu.vector_store %arg5[%c0_14, %c0_15], %20 {strides = array<i32>} : memref<256x128xf32, #tpu.memory_space<vmem>>, vector<256x128xf32>,
    } else {
    }
    return
  }
  func.func @transform_0(%arg0: i32, %arg1: i32) -> (i32, i32) {
    %c0_i32 = arith.constant 0 : i32
    return %arg0, %arg1 : i32, i32
  }
  func.func @transform_1(%arg0: i32, %arg1: i32) -> (i32, i32) {
    %c0_i32 = arith.constant 0 : i32
    %c0_i32_0 = arith.constant 0 : i32
    %c0_i32_1 = arith.constant 0 : i32
    return %c0_i32, %c0_i32_0 : i32, i32
  }
  func.func @transform_2(%arg0: i32, %arg1: i32) -> (i32, i32) {
    %c0_i32 = arith.constant 0 : i32
    %c0_i32_0 = arith.constant 0 : i32
    %c0_i32_1 = arith.constant 0 : i32
    return %c0_i32, %c0_i32_0 : i32, i32
  }
  func.func @transform_3(%arg0: i32, %arg1: i32) -> (i32, i32) {
    %c0_i32 = arith.constant 0 : i32
    %c0_i32_0 = arith.constant 0 : i32
    return %arg0, %c0_i32 : i32, i32
  }
}

</mosaic_0001>

<bundles_post_ra>
// kernel: tpu_custom_call.1
= control target key start
LH: loop header
LB: loop body
LE: loop exit
PB: predicated region body
PF: predicated region fallthrough
CT: control target
= control target key end

     0   :  { %8 = vsyncpa [#allocation3], 0  ;;  %s1638_s0 = inlined_call_operand.hbm [shape: bf16[512,128], index: 0, kind: input, shape index: {}]   ;;  %s1639_s1 = inlined_call_operand.hbm [shape: bf16[128,128], index: 1, kind: input, shape index: {}]   ;;  %s1640_s2 = inlined_call_operand.vmem [shape: f32[1,128], index: 2, kind: input, shape index: {}]   ;;  %s1641_s3 = inlined_call_operand.hbm [shape: f32[512,128], index: 3, kind: output, shape index: {}]  }
   0x1   :  { %10 = vsyncpa [#allocation3 + $0x1], 0 }
   0x2   :  { %11 = vsyncpa [#allocation6], 0 }
   0x3   :  { %12 = vsyncpa [#allocation4], 0 }
   0x4   :  { %14 = vsyncpa [#allocation4 + $0x1], 0  ;;  %s1360_s12 = smov 0   ;;  %s1362_s13 = smov 0  }
   0x5   :  { %s1364_s14 = smov 0   ;;  %s1366_s15 = smov 0  }
   0x6   :  { %s1368_s16 = smov 0   ;;  %s1370_s17 = smov 0  }
   0x7 LB: > { %s959_s18 = sadd.s32 4294967295, %s1331_s17   ;;  %s960_s19 = sadd.s32 4294967294, %s1331_s17   ;;  %s1331_s17 = sphi %s1370_s17, %s20_s17   ;;  %s1327_s16 = sphi %s1368_s16, %s1663_s16   ;;  %s1323_s15 = sphi %s1366_s15, %s1662_s15   ;;  %s1319_s14 = sphi %s1364_s14, %s1661_s14   ;;  %s1315_s13 = sphi %s1362_s13, %s1660_s13   ;;  %s1311_s12 = sphi %s1360_s12, %s1659_s12  }
   0x8   : > { %p54_p0 = scmp.ne.s32.totalorder %s1315_s13, %s1311_s12  ;;  %p1394_p1 = scmp.eq.s32.totalorder %s959_s18, 0 }
   0x9   : > { %p1398_p2 = scmp.eq.s32.totalorder %s959_s18, 1  ;;  %p126_p3 = scmp.eq.s32.totalorder %s960_s19, 1 }
   0xa   : > { %p1404_p4 = por %p1394_p1, %p54_p0  ;;  %p961_p5 = scmp.ge.s32.totalorder %s1331_s17, 1 }
   0xb   : > { %p1409_p6 = por %p126_p3, %p54_p0  ;;  %p133_p7 = scmp.lt.s32.totalorder %s1331_s17, 3 }
   0xc   : > { %s1647_s22 = scalar_select %p1404_p4, 1, 0 }
   0xd   : > { %s1648_s23 = scalar_select %p1409_p6, 1, 0 }
   0xe   : > { %p1414_p8 = pnand %p961_p5, %p133_p7  ;;  %s1333_s25 = smov [#allocation5]  }
   0xf   : > { %s145_s26 = sshll.u32 %s1333_s25, 4  ;;  %s32_s28 = sadd.s32 1, %s1327_s16  ;;  %s146_s26 = int_to_ptr.vmem [resolvable:$true] %s145_s26 }
  0x10   : > { %p1099_p9 = pneg %p1414_p8  ;;  %s1204_s29 = scalar_lea.vmem %s146_s26, 1024 }
  0x11   : > { %p1205_p13 = scmp.ne.s32.totalorder %s146_s26, %s1204_s29  ;;  %p1212_p5 = scmp.lt.s32.totalorder %s146_s26, %s146_s26 }
  0x12   : > { %p1423_p11 = pnand %p1099_p9, %p1394_p1  ;;  %p1213_p7 = scmp.lt.s32.totalorder %s1204_s29, %s1204_s29 }
  0x14   : > { %p1195_p12 = pneg %p1423_p11  ;;  %p1214_p6 = por %p1213_p7, %p1212_p5 }
  0x16   : > { %p1207_p0 = pnand %p1205_p13, %p1195_p12 }
  0x18   : > { %p1208_p3 = pneg %p1207_p0 }
  0x1a   : > { %p1215_p4 = pnand %p1214_p6, %p1208_p3 }
  0x1c   : > { %1218 = shalt.err (!%p1215_p4)
}
  0x1d   : > { %s1643_s30 = smov 64   ;;  %s1644_s4 = smov 4  }
  0x1e   : > { %1102 = dma.hbm_to_vmem [thread:$0]  (!%p1423_p11), %s1639_s1, 1024, %s146_s26, [#allocation6], %s1643_s30, %s1643_s30, %s1644_s4  }
  0x1f   : > { %p34_p4 = scmp.ge.s32.totalorder %s32_s28, 2  ;;  %s41_s7 = sadd.s32 1, %s1319_s14 }
  0x20   : > { %p48_p6 = scmp.ne.s32.totalorder %s1319_s14, %s1315_s13  ;;  %p49_p9 = scmp.eq.s32.totalorder %s1331_s17, 0 }
  0x21   : > { %s1665_s28 = smov (%p34_p4, %s32_s28), 0  ;;  %p1112_p0 = scmp.lt.s32.totalorder %s1331_s17, 2 }
  0x22   : > { %p1444_p12 = por %p49_p9, %p48_p6  ;;  %p1450_p13 = por %p1398_p2, %p48_p6 }
  0x23   : > { %s36_s10 = ssub.s32 %s1327_s16, %s1665_s28  ;;  %s162_s11 = sand.u32 1, %s1319_s14  }
  0x24   : > { %p39_p11 = scmp.eq.s32.totalorder %s36_s10, 0  ;;  %s964_s18 = sshll.u32 %s162_s11, 7 }
  0x25   : > { %s1001_s25 = sshll.u32 %s1327_s16, 11  ;;  %s166_s5 = scalar_lea.vmem [#allocation2], %s964_s18 }
  0x26   : > { %s1459_s19 = scalar_select %p39_p11, %s1319_s14, %s41_s7  }
  0x27   : > { %s173_s29 = scalar_lea.hbm %s1638_s0, %s1001_s25  ;;  %s174_s6 = sshll.u32 %s166_s5, 4  ;;  %s175_s6 = int_to_ptr.vmem [resolvable:$true] %s174_s6 }
  0x28   : > { %p1467_p2 = pnand %p1112_p0, %p1444_p12  ;;  %s163_s30 = scalar_lea.sflag [#allocation3], %s162_s11 }
  0x29   : > { %s1232_s10 = scalar_lea.vmem %s175_s6, 2048  ;;  %s1336_s7 = smov [#allocation2]  }
  0x2a   : > { %p1221_p3 = pneg %p1467_p2  ;;  %p1233_p5 = scmp.ne.s32.totalorder %s175_s6, %s1232_s10 }
  0x2b   : > { %s1237_s4 = sshll.u32 %s1336_s7, 4  ;;  %s1238_s4 = int_to_ptr.vmem [resolvable:$false] %s1237_s4 }
  0x2c   : > { %p1235_p7 = pnand %p1233_p5, %p1221_p3  ;;  %s1239_s25 = scalar_lea.vmem %s1238_s4, 4096 }
  0x2d   : > { %p1240_p6 = scmp.lt.s32.totalorder %s175_s6, %s1238_s4  ;;  %p1241_p9 = scmp.lt.s32.totalorder %s1239_s25, %s1232_s10 }
  0x2e   : > { %p1236_p4 = pneg %p1235_p7 }
  0x2f   : > { %p1242_p11 = por %p1241_p9, %p1240_p6 }
  0x31   : > { %p1243_p10 = pnand %p1242_p11, %p1236_p4 }
  0x33   : > { %1246 = shalt.err (!%p1243_p10)
}
  0x34   : > { %s1654_s8 = smov 4   ;;  %s1655_s18 = smov 64  }
  0x35   : > { %1106 = dma.hbm_to_vmem [thread:$0]  (!%p1467_p2), %s173_s29, 2048, %s175_s6, %s163_s30, %s1655_s18, %s1655_s18, %s1654_s8  }
  0x36   : > { %186 = sbr.rel (%p1414_p8) target bundleno = 336 (0x150), region = 32  ;;  %s1481_s11 = sand.u32 (!%p1414_p8), 1, %s1315_s13  }
  0x37   : > { %s968_s4 = sshll.u32 (!%p1414_p8), %s1481_s11, 7  ;;  %s189_s26 = scalar_lea.sflag (!%p1414_p8), [#allocation3], %s1481_s11 }
  0x38   : > { %s1485_s27 = scalar_lea.vmem (!%p1414_p8), [#allocation2], %s968_s4  ;;  %p1656_p10 = scmp.ne.s32.totalorder (!%p1414_p8), %s1647_s22, 0 }
  0x3b   : > { %1298 = dma.done.wait (%p1656_p10), %s189_s26, 2048  }
  0x3c   : > { %1300 = vsyncadd (%p1656_p10), %s189_s26, 4294965248 }
  0x3d   : > { %1302 = dma.done.wait (%p1394_p1), [#allocation6], 1024  }
  0x3e   : > { %1304 = vsyncadd (%p1394_p1), [#allocation6], 4294966272  ;;  %v1169_v0 = vld [vmem:[#allocation5 + $0x38] sm:$0xff]   ;;  %v1170_v1 = vld [vmem:[#allocation5 + $0x30] sm:$0xff]   ;;  %s970_s24 = sshll.u32 %s1481_s11, 8  ;;  %s1002_s29 = sshll.u32 %s1323_s15, 12 }
  0x3f   : > { %1027 = vmatprep.subr.bf16.mxu0 %v1169_v0  ;;  %1075 = vmatprep.subr.bf16.mxu1 %v1169_v0  ;;  %v1171_v2 = vld [vmem:[#allocation5 + $0x28] sm:$0xff]   ;;  %v1172_v3 = vld [vmem:[#allocation5 + $0x20] sm:$0xff]   ;;  %v1173_v6 = vld [vmem:[#allocation5 + $0x18] sm:$0xff]   ;;  %s1521_s30 = scalar_lea.vmem [#allocation7], %s970_s24  ;;  %s1584_s15 = scalar_lea.hbm %s1641_s3, %s1002_s29 }
  0x40   : > { %1028 = vmatpush3.bf16.msra.mxu0 %v1169_v0  ;;  %1083 = vmatpush3.bf16.msra.mxu1 %v1169_v0  ;;  %v1177_v4 = vld [vmem:[%s1485_s27] sm:$0xff]   ;;  %v1174_v7 = vld [vmem:[#allocation5 + $0x10] sm:$0xff]   ;;  %v1175_v8 = vld [vmem:[#allocation5 + $0x8] sm:$0xff]   ;;  %s864_s5 = sshll.u32 %s1521_s30, 4  ;;  %s851_s10 = scalar_lea.sflag [#allocation4], %s1481_s11  ;;  %s1586_s5 = int_to_ptr.vmem [resolvable:$true] %s864_s5 }
  0x41   : > { %1029 = vmatprep.subr.bf16.mxu0 %v1170_v1  ;;  %1076 = vmatprep.subr.bf16.mxu1 %v1170_v1  ;;  %v1178_v5 = vld [vmem:[%s1485_s27 + $0x40] sm:$0xff]   ;;  %v1179_v10 = vld [vmem:[%s1485_s27 + $0x8] sm:$0xff]   ;;  %v1181_v12 = vld [vmem:[%s1485_s27 + $0x10] sm:$0xff]   ;;  %s1247_s7 = scalar_lea.vmem %s1586_s5, 4096  ;;  %s1337_s25 = smov [#allocation7]  }
  0x42   : > { %1043 = vmatprep.mubr.bf16.mxu0 %v1177_v4  ;;  %1059 = vmatprep.mubr.bf16.mxu1 %v1178_v5  ;;  %v1176_v9 = vld [vmem:[#allocation5] sm:$0xff]   ;;  %v1180_v11 = vld [vmem:[%s1485_s27 + $0x48] sm:$0xff]   ;;  %v1182_v13 = vld [vmem:[%s1485_s27 + $0x50] sm:$0xff]   ;;  %p1248_p1 = scmp.ne.s32.totalorder %s1586_s5, %s1247_s7  ;;  %s1251_s8 = sshll.u32 %s1337_s25, 4  ;;  %s1252_s8 = int_to_ptr.vmem [resolvable:$false] %s1251_s8 }
  0x43   : > { %v1183_v14 = vld [vmem:[%s1485_s27 + $0x18] sm:$0xff]   ;;  %v1185_v16 = vld [vmem:[%s1485_s27 + $0x20] sm:$0xff]   ;;  %v1187_v18 = vld [vmem:[%s1485_s27 + $0x28] sm:$0xff]   ;;  %s1253_s18 = scalar_lea.vmem %s1252_s8, 8192  ;;  %p1254_p0 = scmp.lt.s32.totalorder %s1586_s5, %s1252_s8 }
  0x44   : > { %1030 = vmatpush3.bf16.msra.mxu0 %v1170_v1  ;;  %1084 = vmatpush3.bf16.msra.mxu1 %v1170_v1  ;;  %v1184_v15 = vld [vmem:[%s1485_s27 + $0x58] sm:$0xff]   ;;  %v1186_v17 = vld [vmem:[%s1485_s27 + $0x60] sm:$0xff]   ;;  %v1188_v19 = vld [vmem:[%s1485_s27 + $0x68] sm:$0xff]   ;;  %p1249_p8 = pnand %p1248_p1, %p1450_p13  ;;  %p1255_p2 = scmp.lt.s32.totalorder %s1253_s18, %s1247_s7 }
  0x45   : > { %1031 = vmatprep.subr.bf16.mxu0 %v1171_v2  ;;  %1077 = vmatprep.subr.bf16.mxu1 %v1171_v2  ;;  %v1189_v20 = vld [vmem:[%s1485_s27 + $0x30] sm:$0xff]   ;;  %v1191_v22 = vld [vmem:[%s1485_s27 + $0x38] sm:$0xff]   ;;  %v1514_v25 = vld [vmem:[%s1640_s2] ss:$0 sm:$0xff] }
  0x46   : > { %v1190_v21 = vld [vmem:[%s1485_s27 + $0x70] sm:$0xff]   ;;  %v1192_v23 = vld [vmem:[%s1485_s27 + $0x78] sm:$0xff]   ;;  %p1250_p12 = pneg %p1249_p8  ;;  %p1256_p3 = por %p1255_p2, %p1254_p0 }
  0x48   : > { %1032 = vmatpush3.bf16.msra.mxu0 %v1171_v2  ;;  %1085 = vmatpush3.bf16.msra.mxu1 %v1171_v2  ;;  %p1257_p5 = pnand %p1256_p3, %p1250_p12 }
  0x49   : > { %1033 = vmatprep.subr.bf16.mxu0 %v1172_v3  ;;  %1078 = vmatprep.subr.bf16.mxu1 %v1172_v3 }
  0x4c   : > { %1034 = vmatpush3.bf16.msra.mxu0 %v1172_v3  ;;  %1086 = vmatpush3.bf16.msra.mxu1 %v1172_v3 }
  0x4d   : > { %1035 = vmatprep.subr.bf16.mxu0 %v1173_v6  ;;  %1079 = vmatprep.subr.bf16.mxu1 %v1173_v6 }
  0x50   : > { %1036 = vmatpush3.bf16.msra.mxu0 %v1173_v6  ;;  %1087 = vmatpush3.bf16.msra.mxu1 %v1173_v6 }
  0x51   : > { %1037 = vmatprep.subr.bf16.mxu0 %v1174_v7  ;;  %1080 = vmatprep.subr.bf16.mxu1 %v1174_v7 }
  0x54   : > { %1038 = vmatpush3.bf16.msra.mxu0 %v1174_v7  ;;  %1088 = vmatpush3.bf16.msra.mxu1 %v1174_v7 }
  0x55   : > { %1039 = vmatprep.subr.bf16.mxu0 %v1175_v8  ;;  %1081 = vmatprep.subr.bf16.mxu1 %v1175_v8 }
  0x58   : > { %1040 = vmatpush3.bf16.msra.mxu0 %v1175_v8  ;;  %1089 = vmatpush3.bf16.msra.mxu1 %v1175_v8 }
  0x59   : > { %1041 = vmatprep.subr.bf16.mxu0 %v1176_v9  ;;  %1082 = vmatprep.subr.bf16.mxu1 %v1176_v9 }
  0x5c   : > { %1042 = vmatpush3.bf16.msra.mxu0 %v1176_v9  ;;  %1090 = vmatpush3.bf16.msra.mxu1 %v1176_v9 }
  0x5f   : > { %1044 = vmatmul.mubr.bf16.vlgmr.msra.gmra.mxu0 %v1179_v10  ;;  %1060 = vmatmul.mubr.bf16.vlgmr.msra.gmra.mxu1 %v1180_v11 }
  0x60   : > { %1047 = vmatprep.mubr.bf16.mxu0 %v1181_v12  ;;  %1063 = vmatprep.mubr.bf16.mxu1 %v1182_v13 }
  0x67   : > { %1048 = vmatmul.mubr.bf16.gmra.mxu0 %v1183_v14  ;;  %1064 = vmatmul.mubr.bf16.gmra.mxu1 %v1184_v15 }
  0x68   : > { %1051 = vmatprep.mubr.bf16.mxu0 %v1185_v16  ;;  %1067 = vmatprep.mubr.bf16.mxu1 %v1186_v17 }
  0x6f   : > { %1052 = vmatmul.mubr.bf16.gmra.mxu0 %v1187_v18  ;;  %1068 = vmatmul.mubr.bf16.gmra.mxu1 %v1188_v19 }
  0x70   : > { %1055 = vmatprep.mubr.bf16.mxu0 %v1189_v20  ;;  %1071 = vmatprep.mubr.bf16.mxu1 %v1190_v21 }
  0x77   : > { %1056 = vmatmul.mubr.bf16.gmra.mxu0 %v1191_v22  ;;  %1072 = vmatmul.mubr.bf16.gmra.mxu1 %v1192_v23 }
 0x11f   : > { %v1045_v24 = vpop.f32.mrf.mxu0  ;;  %v1061_v26 = vpop.f32.mrf.mxu1 }
 0x120   : > { %v756_v29 = vadd.f32 %v1045_v24, %v1514_v25  ;;  %v772_v30 = vadd.f32 %v1061_v26, %v1514_v25 }
 0x121   : > { %v521_v27 = vpop.f32.mrf.mxu0  ;;  %v585_v28 = vpop.f32.mrf.mxu1 }
 0x122   : > { %v788_v33 = vmax.f32 %v756_v29, 0.0  ;;  %v804_v34 = vmax.f32 %v772_v30, 0.0  ;;  %v754_v35 = vadd.f32 %v1514_v25, %v521_v27  ;;  %v770_v36 = vadd.f32 %v1514_v25, %v585_v28 }
 0x123   : > { %v1046_v31 = vpop.f32.mrf.mxu0  ;;  %v1062_v32 = vpop.f32.mrf.mxu1 }
 0x124   : > { %820 = vst [vmem:[%s1521_s30 + $0x10] sm:$0xff] %v788_v33  ;;  %836 = vst [vmem:[%s1521_s30 + $0x90] sm:$0xff] %v804_v34  ;;  %v786_v39 = vmax.f32 %v754_v35, 0.0  ;;  %v802_v40 = vmax.f32 %v770_v36, 0.0  ;;  %v757_v41 = vadd.f32 %v1046_v31, %v1514_v25  ;;  %v773_v42 = vadd.f32 %v1062_v32, %v1514_v25 }
 0x125   : > { %v524_v37 = vpop.f32.mrf.mxu0  ;;  %v588_v38 = vpop.f32.mrf.mxu1 }
 0x126   : > { %818 = vst [vmem:[%s1521_s30] sm:$0xff] %v786_v39  ;;  %834 = vst [vmem:[%s1521_s30 + $0x80] sm:$0xff] %v802_v40  ;;  %v755_v45 = vadd.f32 %v1514_v25, %v524_v37  ;;  %v771_v46 = vadd.f32 %v1514_v25, %v588_v38  ;;  %v789_v47 = vmax.f32 %v757_v41, 0.0  ;;  %v805_v48 = vmax.f32 %v773_v42, 0.0 }
 0x127   : > { %v1049_v43 = vpop.f32.mrf.mxu0  ;;  %v1065_v44 = vpop.f32.mrf.mxu1 }
 0x128   : > { %v787_v51 = vmax.f32 %v755_v45, 0.0  ;;  %v803_v52 = vmax.f32 %v771_v46, 0.0  ;;  %v760_v53 = vadd.f32 %v1049_v43, %v1514_v25  ;;  %v776_v54 = vadd.f32 %v1065_v44, %v1514_v25  ;;  %821 = vst [vmem:[%s1521_s30 + $0x18] sm:$0xff] %v789_v47  ;;  %837 = vst [vmem:[%s1521_s30 + $0x98] sm:$0xff] %v805_v48 }
 0x129   : > { %v537_v49 = vpop.f32.mrf.mxu0  ;;  %v601_v50 = vpop.f32.mrf.mxu1 }
 0x12a   : > { %819 = vst [vmem:[%s1521_s30 + $0x8] sm:$0xff] %v787_v51  ;;  %835 = vst [vmem:[%s1521_s30 + $0x88] sm:$0xff] %v803_v52  ;;  %v792_v57 = vmax.f32 %v760_v53, 0.0  ;;  %v808_v58 = vmax.f32 %v776_v54, 0.0  ;;  %v758_v59 = vadd.f32 %v1514_v25, %v537_v49  ;;  %v774_v60 = vadd.f32 %v1514_v25, %v601_v50 }
 0x12b   : > { %v1050_v55 = vpop.f32.mrf.mxu0  ;;  %v1066_v56 = vpop.f32.mrf.mxu1 }
 0x12c   : > { %824 = vst [vmem:[%s1521_s30 + $0x30] sm:$0xff] %v792_v57  ;;  %840 = vst [vmem:[%s1521_s30 + $0xb0] sm:$0xff] %v808_v58  ;;  %v761_v63 = vadd.f32 %v1050_v55, %v1514_v25  ;;  %v777_v0 = vadd.f32 %v1066_v56, %v1514_v25  ;;  %v790_v1 = vmax.f32 %v758_v59, 0.0  ;;  %v806_v2 = vmax.f32 %v774_v60, 0.0 }
 0x12d   : > { %v540_v61 = vpop.f32.mrf.mxu0  ;;  %v604_v62 = vpop.f32.mrf.mxu1 }
 0x12e   : > { %v793_v5 = vmax.f32 %v761_v63, 0.0  ;;  %v809_v6 = vmax.f32 %v777_v0, 0.0  ;;  %v759_v7 = vadd.f32 %v1514_v25, %v540_v61  ;;  %v775_v8 = vadd.f32 %v1514_v25, %v604_v62  ;;  %822 = vst [vmem:[%s1521_s30 + $0x20] sm:$0xff] %v790_v1  ;;  %838 = vst [vmem:[%s1521_s30 + $0xa0] sm:$0xff] %v806_v2 }
 0x12f   : > { %v1053_v3 = vpop.f32.mrf.mxu0  ;;  %v1069_v4 = vpop.f32.mrf.mxu1 }
 0x130   : > { %825 = vst [vmem:[%s1521_s30 + $0x38] sm:$0xff] %v793_v5  ;;  %841 = vst [vmem:[%s1521_s30 + $0xb8] sm:$0xff] %v809_v6  ;;  %v791_v11 = vmax.f32 %v759_v7, 0.0  ;;  %v807_v12 = vmax.f32 %v775_v8, 0.0  ;;  %v764_v13 = vadd.f32 %v1053_v3, %v1514_v25  ;;  %v780_v14 = vadd.f32 %v1069_v4, %v1514_v25 }
 0x131   : > { %v553_v9 = vpop.f32.mrf.mxu0  ;;  %v617_v10 = vpop.f32.mrf.mxu1 }
 0x132   : > { %823 = vst [vmem:[%s1521_s30 + $0x28] sm:$0xff] %v791_v11  ;;  %839 = vst [vmem:[%s1521_s30 + $0xa8] sm:$0xff] %v807_v12  ;;  %v762_v17 = vadd.f32 %v1514_v25, %v553_v9  ;;  %v778_v18 = vadd.f32 %v1514_v25, %v617_v10  ;;  %v796_v19 = vmax.f32 %v764_v13, 0.0  ;;  %v812_v20 = vmax.f32 %v780_v14, 0.0 }
 0x133   : > { %v1054_v15 = vpop.f32.mrf.mxu0  ;;  %v1070_v16 = vpop.f32.mrf.mxu1 }
 0x134   : > { %v794_v23 = vmax.f32 %v762_v17, 0.0  ;;  %v810_v24 = vmax.f32 %v778_v18, 0.0  ;;  %v765_v26 = vadd.f32 %v1054_v15, %v1514_v25  ;;  %v781_v27 = vadd.f32 %v1070_v16, %v1514_v25  ;;  %828 = vst [vmem:[%s1521_s30 + $0x50] sm:$0xff] %v796_v19  ;;  %844 = vst [vmem:[%s1521_s30 + $0xd0] sm:$0xff] %v812_v20 }
 0x135   : > { %v556_v21 = vpop.f32.mrf.mxu0  ;;  %v620_v22 = vpop.f32.mrf.mxu1 }
 0x136   : > { %826 = vst [vmem:[%s1521_s30 + $0x40] sm:$0xff] %v794_v23  ;;  %842 = vst [vmem:[%s1521_s30 + $0xc0] sm:$0xff] %v810_v24  ;;  %v797_v30 = vmax.f32 %v765_v26, 0.0  ;;  %v813_v31 = vmax.f32 %v781_v27, 0.0  ;;  %v763_v32 = vadd.f32 %v1514_v25, %v556_v21  ;;  %v779_v33 = vadd.f32 %v1514_v25, %v620_v22 }
 0x137   : > { %v1057_v28 = vpop.f32.mrf.mxu0  ;;  %v1073_v29 = vpop.f32.mrf.mxu1 }
 0x138   : > { %829 = vst [vmem:[%s1521_s30 + $0x58] sm:$0xff] %v797_v30  ;;  %845 = vst [vmem:[%s1521_s30 + $0xd8] sm:$0xff] %v813_v31  ;;  %v768_v36 = vadd.f32 %v1057_v28, %v1514_v25  ;;  %v784_v37 = vadd.f32 %v1073_v29, %v1514_v25  ;;  %v795_v38 = vmax.f32 %v763_v32, 0.0  ;;  %v811_v39 = vmax.f32 %v779_v33, 0.0 }
 0x139   : > { %v569_v34 = vpop.f32.mrf.mxu0  ;;  %v633_v35 = vpop.f32.mrf.mxu1 }
 0x13a   : > { %v800_v42 = vmax.f32 %v768_v36, 0.0  ;;  %v816_v43 = vmax.f32 %v784_v37, 0.0  ;;  %v766_v44 = vadd.f32 %v1514_v25, %v569_v34  ;;  %v782_v45 = vadd.f32 %v1514_v25, %v633_v35  ;;  %827 = vst [vmem:[%s1521_s30 + $0x48] sm:$0xff] %v795_v38  ;;  %843 = vst [vmem:[%s1521_s30 + $0xc8] sm:$0xff] %v811_v39 }
 0x13b   : > { %v1058_v40 = vpop.f32.mrf.mxu0  ;;  %v1074_v41 = vpop.f32.mrf.mxu1 }
 0x13c   : > { %832 = vst [vmem:[%s1521_s30 + $0x70] sm:$0xff] %v800_v42  ;;  %848 = vst [vmem:[%s1521_s30 + $0xf0] sm:$0xff] %v816_v43  ;;  %v798_v48 = vmax.f32 %v766_v44, 0.0  ;;  %v814_v49 = vmax.f32 %v782_v45, 0.0  ;;  %v769_v50 = vadd.f32 %v1058_v40, %v1514_v25  ;;  %v785_v51 = vadd.f32 %v1074_v41, %v1514_v25 }
 0x13d   : > { %v572_v46 = vpop.f32.mrf.mxu0  ;;  %v636_v47 = vpop.f32.mrf.mxu1 }
 0x13e   : > { %830 = vst [vmem:[%s1521_s30 + $0x60] sm:$0xff] %v798_v48  ;;  %846 = vst [vmem:[%s1521_s30 + $0xe0] sm:$0xff] %v814_v49  ;;  %v767_v52 = vadd.f32 %v1514_v25, %v572_v46  ;;  %v783_v53 = vadd.f32 %v1514_v25, %v636_v47  ;;  %v801_v54 = vmax.f32 %v769_v50, 0.0  ;;  %v817_v55 = vmax.f32 %v785_v51, 0.0 }
 0x140   : > { %v799_v56 = vmax.f32 %v767_v52, 0.0  ;;  %v815_v57 = vmax.f32 %v783_v53, 0.0  ;;  %833 = vst [vmem:[%s1521_s30 + $0x78] sm:$0xff] %v801_v54  ;;  %849 = vst [vmem:[%s1521_s30 + $0xf8] sm:$0xff] %v817_v55 }
 0x142   : > { %831 = vst [vmem:[%s1521_s30 + $0x68] sm:$0xff] %v799_v56  ;;  %847 = vst [vmem:[%s1521_s30 + $0xe8] sm:$0xff] %v815_v57 }
 0x143   : > { %1260 = shalt.err (!%p1257_p5)
}
 0x144   : > { %s1261_s4 = scalar_lea.hbm %s1584_s15, 4096  ;;  %s1265_s20 = scalar_lea.hbm %s1641_s3, 8192 }
 0x145   : > { %p1262_p7 = scmp.ne.s32.totalorder %s1584_s15, %s1261_s4  ;;  %p1266_p9 = scmp.lt.s32.totalorder %s1584_s15, %s1641_s3 }
 0x146   : > { %p1267_p11 = scmp.lt.s32.totalorder %s1265_s20, %s1261_s4 }
 0x147   : > { %p1263_p4 = pnand %p1262_p7, %p1450_p13 }
 0x148   : > { %p1268_p10 = por %p1267_p11, %p1266_p9 }
 0x149   : > { %p1264_p6 = pneg %p1263_p4 }
 0x14b   : > { %p1269_p1 = pnand %p1268_p10, %p1264_p6 }
 0x14d   : > { %1272 = shalt.err (!%p1269_p1)
}
 0x14e   : > { %s1338_s30 = smov 128   ;;  %s1339_s29 = smov 8  }
 0x14f   : > { %1097 = dma.vmem_to_hbm [thread:$0]  (%p1450_p13), %s1586_s5, 4096, %s1584_s15, %s851_s10, %s1338_s30, %s1338_s30, %s1339_s29  }
 0x150 PF: > { %s879_s6 = sand.u32 1, %s1311_s12   ;;  %p1657_p8 = scmp.ne.s32.totalorder %s1648_s23, 0 }
 0x151   : > { %p1658_p12 = scmp.ge.s32.totalorder %s1331_s17, 2  ;;  %s880_s21 = scalar_lea.sflag [#allocation4], %s879_s6 }
 0x153   : > { %p1108_p0 = pnand %p1658_p12, %p1657_p8 }
 0x155   : > { %p1109_p2 = pneg %p1108_p0 }
 0x157   : > { %1306 = dma.done.wait (%p1109_p2), %s880_s21, 4096  }
 0x158   : > { %1308 = vsyncadd (%p1109_p2), %s880_s21, 4294963200  ;;  %s20_s17 = sadd.s32 1, %s1331_s17   ;;  %s1659_s12 = smov %s1315_s13 }
 0x159   : > { %p17_p3 = scmp.ge.s32.totalorder %s20_s17, 4   ;;  %s1660_s13 = smov %s1319_s14 }
 0x15a   : > { %s1661_s14 = smov %s1459_s19  ;;  %s1662_s15 = smov %s1327_s16 }
 0x15b   : > { %s1663_s16 = smov %s1665_s28  ;;  %19 = sbr.rel (!%p17_p3) target bundleno = 7 (0x7), region = 90 }
 0x160   :  { %885 = vsyncpa [#allocation3], 1 }
 0x161   :  { %887 = vsyncpa [#allocation3 + $0x1], 1 }
 0x162   :  { %888 = vsyncpa [#allocation6], 1 }
 0x163   :  { %889 = vsyncpa [#allocation4], 1 }
 0x164   :  { %891 = vsyncpa [#allocation4 + $0x1], 1 }

</bundles_post_ra>
